<compile_context>
chip_gen: v5e
topology: v5e:2x2
jax: 0.10.0
libtpu: 0.0.40
codegen_flags: <defaults>
</compile_context>

<pallas_src>
import jax
import jax.numpy as jnp
from jax import lax
from jax.experimental import pallas as pl
from jax.experimental.pallas import tpu as pltpu


NORM_EPS = 1e-6   # RMSNorm eps (RMSNorm class not given; standard eps assumed)
ATTN_EPS = 1e-6   # matches `scale + 1e-06` in the PyTorch forward


# --------------------------------------------------------------------------
# Kernel
# --------------------------------------------------------------------------
def _make_kernel(Bt, N, M, dh, mm_dtype, approx_recip):
    inv_dh = 1.0 / dh

    def kernel(x_ref, y_ref, wq_ref, wk_ref, wv_ref, wck_ref, wcv_ref,
               wo_ref, vec_ref, mask_ref, o_ref, merged_ref):
        # Resident (D, D) block-diagonal head mask (exact 0/1 values, mm_dtype).
        mask = mask_ref[...]

        # Packed (9, D) f32 rows: 6 biases + 3 head-tiled RMSNorm scales.
        bq, bk, bv = vec_ref[0:1, :], vec_ref[1:2, :], vec_ref[2:3, :]
        bck, bcv, bo = vec_ref[3:4, :], vec_ref[4:5, :], vec_ref[5:6, :]
        qw, kw, ckw = vec_ref[6:7, :], vec_ref[7:8, :], vec_ref[8:9, :]

        x2 = x_ref[...]                      # (Bt*N, D) mm_dtype (cast in wrapper)
        y2 = y_ref[...]                      # (Bt*M, D) mm_dtype

        # ---- projections: one lane-dense (rows, D) x (D, D) matmul each ----
        def proj(a, w_ref, b):
            return jnp.dot(a, w_ref[...], preferred_element_type=jnp.float32) + b

        q = proj(x2, wq_ref, bq)             # (Bt*N, D) f32
        k = proj(x2, wk_ref, bk)
        v = proj(x2, wv_ref, bv)
        ck = proj(y2, wck_ref, bck)          # (Bt*M, D) f32
        cv = proj(y2, wcv_ref, bcv)

        # ---- per-head RMSNorm + SiLU; the per-head mean-of-squares is a
        #      lane-dense matmul against the block-diag mask, at mm_dtype rate.
        def rms_silu(t, w):
            ms = jnp.dot((t * t).astype(mm_dtype), mask,
                         preferred_element_type=jnp.float32) * inv_dh
            return jax.nn.silu(t * lax.rsqrt(ms + NORM_EPS) * w)

        qs = rms_silu(q, qw)                 # (Bt*N, D) f32
        ks = rms_silu(k, kw)
        cks = rms_silu(ck, ckw)

        qs_mm, ks_mm = qs.astype(mm_dtype), ks.astype(mm_dtype)
        cks_mm = cks.astype(mm_dtype)
        v_mm, cv_mm = v.astype(mm_dtype), cv.astype(mm_dtype)

        # ---- per-batch-element linear attention (heads fused via the mask;
        #      self + cross accumulated with no concatenation).  Results are
        #      written straight into the persistent VMEM scratch so no per-b
        #      value stays live until the out projection.
        # TODO(synk): benchmark (a) fusing attn+scale into one (N,D)x(D,2D)
        #   MXU push (needs D % 128 == 0 for a cheap lane split) and (b) a
        #   single (N+M, D) kv contraction instead of two short pushes.
        for b in range(Bt):                  # static, small (VMEM-bounded)
            qb = qs_mm[b * N:(b + 1) * N]    # (N, D)
            kb = ks_mm[b * N:(b + 1) * N]
            vb = v_mm[b * N:(b + 1) * N]
            ckb = cks_mm[b * M:(b + 1) * M]  # (M, D)
            cvb = cv_mm[b * M:(b + 1) * M]

            # kv[d, e] = sum_s k[s, d] * v[s, e]  (self + cross, no concat)
            kv = lax.dot_general(kb, vb, (((0,), (0,)), ((), ())),
                                 preferred_element_type=jnp.float32)
            kv = kv + lax.dot_general(ckb, cvb, (((0,), (0,)), ((), ())),
                                      preferred_element_type=jnp.float32)
            kv = kv * mask                   # keep per-head (block-diag) kv

            attn = jnp.dot(qb, kv.astype(mm_dtype),
                           preferred_element_type=jnp.float32)          # (N, D)

            k_sum = (jnp.sum(ks[b * N:(b + 1) * N], axis=0, keepdims=True) +
                     jnp.sum(cks[b * M:(b + 1) * M], axis=0, keepdims=True))
            # per-head scale, broadcast back to all lanes of that head
            scale = jnp.dot((qs[b * N:(b + 1) * N] * k_sum).astype(mm_dtype),
                            mask, preferred_element_type=jnp.float32)   # (N, D)

            inv = pl.reciprocal(scale + ATTN_EPS, approx=approx_recip)
            merged_ref[b * N:(b + 1) * N, :] = attn * inv

        out = jnp.dot(merged_ref[...].astype(mm_dtype), wo_ref[...],
                      preferred_element_type=jnp.float32) + bo
        o_ref[...] = out.astype(o_ref.dtype)

    return kernel


# --------------------------------------------------------------------------
# VMEM sizing
# --------------------------------------------------------------------------
def _vmem_budget_bytes():
    """Per-generation usable VMEM with headroom: ~54 MiB on v7x (64 MiB
    physical), ~108 MiB on v5e/v6e (128 MiB physical)."""
    try:
        cap = int(pltpu.get_tpu_info().vmem_capacity_bytes)
    except Exception:                         # non-TPU / interpret fallback
        cap = 64 << 20
    return max(32 << 20, min(int(cap * 0.85), cap - (8 << 20)))


def _row_mult(itemsize):
    """Sublane packing multiple for block rows (8 f32, 16 bf16, 32 int8)."""
    return max(8, 32 // max(itemsize, 1))


def _per_b_bytes(N, M, D, in_bytes, out_bytes):
    # double-buffered x/y/out slabs + f32 intermediates
    # (q,k,v,ck,cv,qs,ks,cks + merged scratch), with slack for transient casts.
    io = 2 * D * (N * in_bytes + M * in_bytes + N * out_bytes)
    interm = 4 * D * (6 * N + 3 * M)
    return int((io + interm) * 1.3)


def _fixed_bytes(D, mm_bytes):
    # double-buffered weight mats + mask + padded vec rows + per-b kv temps.
    return 2 * 7 * D * D * mm_bytes + 2 * 16 * D * 4 + 2 * D * D * 4


def _choose_block_b(B, N, M, D, in_bytes, out_bytes, budget):
    per_b = _per_b_bytes(N, M, D, in_bytes, out_bytes)
    fixed = _fixed_bytes(D, in_bytes) + (6 << 20)
    bt = max(1, min(B, (budget - fixed) // max(per_b, 1)))
    if B >= 2:
        bt = max(1, min(bt, B // 2))          # >= 2 grid steps when possible
    m = max(_row_mult(in_bytes), _row_mult(out_bytes))

    def ok(t):
        return B % t == 0 and (t == B or ((t * N) % m == 0 and (t * M) % m == 0))

    cands = [t for t in range(bt, 0, -1) if ok(t)]
    if not cands:
        return B                              # full-array blocks always legal
    best = cands[0]
    for t in cands:                           # prefer an even step count (v7x)
        if (B // t) % 2 == 0 and 2 * t >= best:
            return t
    return best


def _vmem_limit_bytes(Bt, N, M, D, in_bytes, out_bytes, budget):
    est = (_fixed_bytes(D, in_bytes)
           + Bt * _per_b_bytes(N, M, D, in_bytes, out_bytes) + (8 << 20))
    return int(max(32 << 20, min(est, budget)))


# --------------------------------------------------------------------------
# Wrapper
# --------------------------------------------------------------------------
def linear_attn(x, y, params, n_heads, mm_dtype=None, approx_recip=None):
    """x: (B, N, D), y: (B, M, D) -> (B, N, D).

    mm_dtype: dtype fed to the MXU matmuls (accumulation is always f32).
      None -> x.dtype.  Pass jnp.bfloat16 for ~2x MXU throughput and half the
      weight + activation HBM/VMEM traffic.
    approx_recip: None -> approximate EUP reciprocal only in the non-f32 path.
    """
    B, N, D = x.shape
    M = y.shape[1]
    assert D % n_heads == 0
    dh = D // n_heads
    out_dtype = x.dtype
    if mm_dtype is None:
        mm_dtype = x.dtype
    mm_dtype = jnp.dtype(mm_dtype)
    if approx_recip is None:
        approx_recip = mm_dtype != jnp.dtype(jnp.float32)

    wqkv, bqkv, wckv, bckv, wout, bout, qw, kw, ckw = params

    # Pre-split packed qkv / cross_kv weights (no in-kernel lane slicing) and
    # cast matmul operands to mm_dtype once, here.
    wq, wk, wv = (wqkv[:, i * D:(i + 1) * D].astype(mm_dtype) for i in range(3))
    wck, wcv = (wckv[:, i * D:(i + 1) * D].astype(mm_dtype) for i in range(2))
    wo = wout.astype(mm_dtype)

    # Pack the 6 biases + 3 head-tiled RMSNorm rows into one (9, D) constant.
    vecs = jnp.concatenate(
        [bqkv[:, 0:D], bqkv[:, D:2 * D], bqkv[:, 2 * D:3 * D],
         bckv[:, 0:D], bckv[:, D:2 * D], bout,
         jnp.tile(qw, (1, n_heads)), jnp.tile(kw, (1, n_heads)),
         jnp.tile(ckw, (1, n_heads))],
        axis=0).astype(jnp.float32)                               # (9, D)

    # Block-diagonal head mask, precomputed once (exact 0/1 -> safe in bf16).
    head = jnp.arange(D, dtype=jnp.int32) // dh
    mask = (head[:, None] == head[None, :]).astype(mm_dtype)      # (D, D)

    # Flatten to lane-dense 2D slabs; cast activations to mm_dtype up front.
    x2 = x.reshape(B * N, D).astype(mm_dtype)
    y2 = y.reshape(B * M, D).astype(mm_dtype)

    in_bytes = mm_dtype.itemsize
    out_bytes = out_dtype.itemsize
    budget = _vmem_budget_bytes()
    Bt = _choose_block_b(B, N, M, D, in_bytes, out_bytes, budget)
    grid = (B // Bt,)

    kernel = _make_kernel(Bt, N, M, dh, mm_dtype, approx_recip)

    def const_spec(a):
        nd = a.ndim
        return pl.BlockSpec(a.shape, lambda b, _nd=nd: (0,) * _nd)

    weights = (wq, wk, wv, wck, wcv, wo, vecs, mask)

    out2 = pl.pallas_call(
        kernel,
        out_shape=jax.ShapeDtypeStruct((B * N, D), out_dtype),
        grid=grid,
        in_specs=[
            pl.BlockSpec((Bt * N, D), lambda b: (b, 0)),   # x (flattened)
            pl.BlockSpec((Bt * M, D), lambda b: (b, 0)),   # y (flattened)
        ] + [const_spec(w) for w in weights],
        out_specs=pl.BlockSpec((Bt * N, D), lambda b: (b, 0)),
        scratch_shapes=[pltpu.VMEM((Bt * N, D), jnp.float32)],   # merged
        compiler_params=pltpu.CompilerParams(
            dimension_semantics=("parallel",),
            vmem_limit_bytes=_vmem_limit_bytes(
                Bt, N, M, D, in_bytes, out_bytes, budget)),
    )(x2, y2, *weights)
    return out2.reshape(B, N, D)


# --------------------------------------------------------------------------
# Synthetic params + pure-JAX reference
# --------------------------------------------------------------------------
def init_params(key, d_model, n_heads, dtype=jnp.float32):
    """Deterministic synthetic init mirroring nn.Linear / RMSNorm shapes."""
    dh = d_model // n_heads
    ks = jax.random.split(key, 6)
    s = 1.0 / jnp.sqrt(d_model)
    # Linear weights are stored pre-transposed: (in_features, out_features).
    wqkv = jax.random.uniform(ks[0], (d_model, 3 * d_model), dtype, -s, s)
    bqkv = jax.random.uniform(ks[1], (1, 3 * d_model), dtype, -s, s)
    wckv = jax.random.uniform(ks[2], (d_model, 2 * d_model), dtype, -s, s)
    bckv = jax.random.uniform(ks[3], (1, 2 * d_model), dtype, -s, s)
    wout = jax.random.uniform(ks[4], (d_model, d_model), dtype, -s, s)
    bout = jax.random.uniform(ks[5], (1, d_model), dtype, -s, s)
    qw = jnp.ones((1, dh), dtype)
    kw = jnp.ones((1, dh), dtype)
    ckw = jnp.ones((1, dh), dtype)
    return (wqkv, bqkv, wckv, bckv, wout, bout, qw, kw, ckw)


def reference(x, y, params, n_heads):
    """Pure-JAX reference of the PyTorch forward (for validation)."""
    wqkv, bqkv, wckv, bckv, wout, bout, qw, kw, ckw = params
    B, N, D = x.shape
    dh = D // n_heads

    qkv = x @ wqkv + bqkv[0]
    q, k, v = jnp.split(qkv, 3, axis=-1)
    ckv = y @ wckv + bckv[0]
    ck, cv = jnp.split(ckv, 2, axis=-1)

    def split(t):
        return t.reshape(t.shape[0], t.shape[1], n_heads, dh)

    q, k, v, ck, cv = map(split, (q, k, v, ck, cv))

    def rms(t, w):
        return t * jax.lax.rsqrt(jnp.mean(t * t, -1, keepdims=True)
                                 + NORM_EPS) * w[0]

    q, k, ck = rms(q, qw), rms(k, kw), rms(ck, ckw)
    kf = jnp.concatenate([k, ck], axis=1)
    vf = jnp.concatenate([v, cv], axis=1)
    q = jax.nn.silu(q)
    kf = jax.nn.silu(kf)
    ksum = kf.sum(1)                                           # (B, H, dh)
    kv = jnp.einsum('bshd,bshe->bhde', kf, vf)
    attn = jnp.einsum('bnhd,bhde->bnhe', q, kv)
    scale = jnp.einsum('bnhd,bhd->bnh', q, ksum)[..., None]
    attn = attn / (scale + ATTN_EPS)
    return attn.reshape(B, N, D) @ wout + bout[0]


if __name__ == "__main__":
    B, N, M = 2, 8, 16          # batch, self seq len, cross seq len
    d_model, n_heads = 32, 4

    key = jax.random.PRNGKey(0)
    kx, ky, kp = jax.random.split(key, 3)
    x = jax.random.normal(kx, (B, N, d_model), jnp.float32)
    y = jax.random.normal(ky, (B, M, d_model), jnp.float32)
    params = init_params(kp, d_model, n_heads)

    ref = reference(x, y, params, n_heads)

    # Strict path: f32 matmul operands, exact reciprocal -> matches reference.
    out = jax.block_until_ready(linear_attn(x, y, params, n_heads))
    assert out.shape == (B, N, d_model)
    assert jnp.allclose(out, ref, rtol=2e-3, atol=2e-3), (
        float(jnp.max(jnp.abs(out - ref))))

    # Fast path: bf16 MXU operands, f32 accumulation.  The attention
    # denominator `scale + 1e-6` can pass arbitrarily close to zero for random
    # inputs, so bf16 rounding there is unboundedly amplified relative to the
    # f32 reference; validate shape + finiteness (the strict path above checks
    # the math).
    out_bf16 = jax.block_until_ready(
        linear_attn(x, y, params, n_heads, mm_dtype=jnp.bfloat16))
    assert out_bf16.shape == (B, N, d_model)
    assert bool(jnp.all(jnp.isfinite(out_bf16)))

    print("KERNEL_OK")
</pallas_src>

<mosaic_0001>
module attributes {stable_mosaic.version = 11 : i64} {
  func.func @kernel(%arg0: i32, %arg1: memref<8x32xf32, #tpu.memory_space<vmem>>, %arg2: memref<16x32xf32, #tpu.memory_space<vmem>>, %arg3: memref<32x32xf32, #tpu.memory_space<vmem>>, %arg4: memref<32x32xf32, #tpu.memory_space<vmem>>, %arg5: memref<32x32xf32, #tpu.memory_space<vmem>>, %arg6: memref<32x32xf32, #tpu.memory_space<vmem>>, %arg7: memref<32x32xf32, #tpu.memory_space<vmem>>, %arg8: memref<32x32xf32, #tpu.memory_space<vmem>>, %arg9: memref<9x32xf32, #tpu.memory_space<vmem>>, %arg10: memref<32x32xf32, #tpu.memory_space<vmem>>, %arg11: memref<8x32xf32, #tpu.memory_space<vmem>>, %arg12: memref<8x32xf32, #tpu.memory_space<vmem>>) attributes {dimension_semantics = [#tpu.dimension_semantics<parallel>], iteration_bounds = array<i64: 2>, scalar_prefetch = 0 : i64, scratch_operands = 1 : i64, tpu.core_type = #tpu.core_type<tc>, window_params = [{transform_indices = @transform_0, window_bounds = array<i64: 8, 32>}, {transform_indices = @transform_1, window_bounds = array<i64: 16, 32>}, {pipeline_mode = #tpu.pipeline_mode<synchronous>, transform_indices = @transform_2, window_bounds = array<i64: 32, 32>}, {pipeline_mode = #tpu.pipeline_mode<synchronous>, transform_indices = @transform_3, window_bounds = array<i64: 32, 32>}, {pipeline_mode = #tpu.pipeline_mode<synchronous>, transform_indices = @transform_4, window_bounds = array<i64: 32, 32>}, {pipeline_mode = #tpu.pipeline_mode<synchronous>, transform_indices = @transform_5, window_bounds = array<i64: 32, 32>}, {pipeline_mode = #tpu.pipeline_mode<synchronous>, transform_indices = @transform_6, window_bounds = array<i64: 32, 32>}, {pipeline_mode = #tpu.pipeline_mode<synchronous>, transform_indices = @transform_7, window_bounds = array<i64: 32, 32>}, {pipeline_mode = #tpu.pipeline_mode<synchronous>, transform_indices = @transform_8, window_bounds = array<i64: 9, 32>}, {pipeline_mode = #tpu.pipeline_mode<synchronous>, transform_indices = @transform_9, window_bounds = array<i64: 32, 32>}, {transform_indices = @transform_10, window_bounds = array<i64: 8, 32>}]} {
    %c0 = arith.constant 0 : index
    %c0_0 = arith.constant 0 : index
    %0 = vector.load %arg10[%c0, %c0_0] : memref<32x32xf32, #tpu.memory_space<vmem>>, vector<32x32xf32>
    %c0_1 = arith.constant 0 : index
    %c0_2 = arith.constant 0 : index
    %1 = vector.load %arg9[%c0_1, %c0_2] : memref<9x32xf32, #tpu.memory_space<vmem>>, vector<1x32xf32>
    %c1 = arith.constant 1 : index
    %c0_3 = arith.constant 0 : index
    %2 = vector.load %arg9[%c1, %c0_3] : memref<9x32xf32, #tpu.memory_space<vmem>>, vector<1x32xf32>
    %c2 = arith.constant 2 : index
    %c0_4 = arith.constant 0 : index
    %3 = vector.load %arg9[%c2, %c0_4] : memref<9x32xf32, #tpu.memory_space<vmem>>, vector<1x32xf32>
    %c3 = arith.constant 3 : index
    %c0_5 = arith.constant 0 : index
    %4 = vector.load %arg9[%c3, %c0_5] : memref<9x32xf32, #tpu.memory_space<vmem>>, vector<1x32xf32>
    %c4 = arith.constant 4 : index
    %c0_6 = arith.constant 0 : index
    %5 = vector.load %arg9[%c4, %c0_6] : memref<9x32xf32, #tpu.memory_space<vmem>>, vector<1x32xf32>
    %c5 = arith.constant 5 : index
    %c0_7 = arith.constant 0 : index
    %6 = vector.load %arg9[%c5, %c0_7] : memref<9x32xf32, #tpu.memory_space<vmem>>, vector<1x32xf32>
    %c6 = arith.constant 6 : index
    %c0_8 = arith.constant 0 : index
    %7 = vector.load %arg9[%c6, %c0_8] : memref<9x32xf32, #tpu.memory_space<vmem>>, vector<1x32xf32>
    %c7 = arith.constant 7 : index
    %c0_9 = arith.constant 0 : index
    %8 = vector.load %arg9[%c7, %c0_9] : memref<9x32xf32, #tpu.memory_space<vmem>>, vector<1x32xf32>
    %c8 = arith.constant 8 : index
    %c0_10 = arith.constant 0 : index
    %9 = vector.load %arg9[%c8, %c0_10] : memref<9x32xf32, #tpu.memory_space<vmem>>, vector<1x32xf32>
    %c0_11 = arith.constant 0 : index
    %c0_12 = arith.constant 0 : index
    %10 = vector.load %arg1[%c0_11, %c0_12] : memref<8x32xf32, #tpu.memory_space<vmem>>, vector<8x32xf32>
    %c0_13 = arith.constant 0 : index
    %c0_14 = arith.constant 0 : index
    %11 = vector.load %arg2[%c0_13, %c0_14] : memref<16x32xf32, #tpu.memory_space<vmem>>, vector<16x32xf32>
    %c0_15 = arith.constant 0 : index
    %c0_16 = arith.constant 0 : index
    %12 = vector.load %arg3[%c0_15, %c0_16] : memref<32x32xf32, #tpu.memory_space<vmem>>, vector<32x32xf32>
    %cst = arith.constant dense<0.000000e+00> : vector<8x32xf32>
    %13 = tpu.matmul %10, %12, %cst {dimension_numbers = #tpu.dot_dimension_numbers<[1], [0], [0], [1], [0, 0, 1, 1], [], []>} : vector<8x32xf32>, vector<32x32xf32>, vector<8x32xf32> -> vector<8x32xf32>
    %14 = vector.broadcast %1 : vector<1x32xf32> to vector<8x32xf32>
    %15 = arith.addf %13, %14 : vector<8x32xf32>
    %c0_17 = arith.constant 0 : index
    %c0_18 = arith.constant 0 : index
    %16 = vector.load %arg4[%c0_17, %c0_18] : memref<32x32xf32, #tpu.memory_space<vmem>>, vector<32x32xf32>
    %cst_19 = arith.constant dense<0.000000e+00> : vector<8x32xf32>
    %17 = tpu.matmul %10, %16, %cst_19 {dimension_numbers = #tpu.dot_dimension_numbers<[1], [0], [0], [1], [0, 0, 1, 1], [], []>} : vector<8x32xf32>, vector<32x32xf32>, vector<8x32xf32> -> vector<8x32xf32>
    %18 = vector.broadcast %2 : vector<1x32xf32> to vector<8x32xf32>
    %19 = arith.addf %17, %18 : vector<8x32xf32>
    %c0_20 = arith.constant 0 : index
    %c0_21 = arith.constant 0 : index
    %20 = vector.load %arg5[%c0_20, %c0_21] : memref<32x32xf32, #tpu.memory_space<vmem>>, vector<32x32xf32>
    %cst_22 = arith.constant dense<0.000000e+00> : vector<8x32xf32>
    %21 = tpu.matmul %10, %20, %cst_22 {dimension_numbers = #tpu.dot_dimension_numbers<[1], [0], [0], [1], [0, 0, 1, 1], [], []>} : vector<8x32xf32>, vector<32x32xf32>, vector<8x32xf32> -> vector<8x32xf32>
    %22 = vector.broadcast %3 : vector<1x32xf32> to vector<8x32xf32>
    %23 = arith.addf %21, %22 : vector<8x32xf32>
    %c0_23 = arith.constant 0 : index
    %c0_24 = arith.constant 0 : index
    %24 = vector.load %arg6[%c0_23, %c0_24] : memref<32x32xf32, #tpu.memory_space<vmem>>, vector<32x32xf32>
    %cst_25 = arith.constant dense<0.000000e+00> : vector<16x32xf32>
    %25 = tpu.matmul %11, %24, %cst_25 {dimension_numbers = #tpu.dot_dimension_numbers<[1], [0], [0], [1], [0, 0, 1, 1], [], []>} : vector<16x32xf32>, vector<32x32xf32>, vector<16x32xf32> -> vector<16x32xf32>
    %26 = vector.broadcast %4 : vector<1x32xf32> to vector<16x32xf32>
    %27 = arith.addf %25, %26 : vector<16x32xf32>
    %c0_26 = arith.constant 0 : index
    %c0_27 = arith.constant 0 : index
    %28 = vector.load %arg7[%c0_26, %c0_27] : memref<32x32xf32, #tpu.memory_space<vmem>>, vector<32x32xf32>
    %cst_28 = arith.constant dense<0.000000e+00> : vector<16x32xf32>
    %29 = tpu.matmul %11, %28, %cst_28 {dimension_numbers = #tpu.dot_dimension_numbers<[1], [0], [0], [1], [0, 0, 1, 1], [], []>} : vector<16x32xf32>, vector<32x32xf32>, vector<16x32xf32> -> vector<16x32xf32>
    %30 = vector.broadcast %5 : vector<1x32xf32> to vector<16x32xf32>
    %31 = arith.addf %29, %30 : vector<16x32xf32>
    %32 = arith.mulf %15, %15 : vector<8x32xf32>
    %cst_29 = arith.constant dense<0.000000e+00> : vector<8x32xf32>
    %33 = tpu.matmul %32, %0, %cst_29 {dimension_numbers = #tpu.dot_dimension_numbers<[1], [0], [0], [1], [0, 0, 1, 1], [], []>} : vector<8x32xf32>, vector<32x32xf32>, vector<8x32xf32> -> vector<8x32xf32>
    %cst_30 = arith.constant 1.250000e-01 : f32
    %34 = vector.broadcast %cst_30 : f32 to vector<8x32xf32>
    %35 = arith.mulf %33, %34 : vector<8x32xf32>
    %cst_31 = arith.constant 9.99999997E-7 : f32
    %36 = vector.broadcast %cst_31 : f32 to vector<8x32xf32>
    %37 = arith.addf %35, %36 : vector<8x32xf32>
    %38 = math.rsqrt %37 : vector<8x32xf32>
    %39 = arith.mulf %15, %38 : vector<8x32xf32>
    %40 = vector.broadcast %7 : vector<1x32xf32> to vector<8x32xf32>
    %41 = arith.mulf %39, %40 : vector<8x32xf32>
    %42 = arith.negf %41 : vector<8x32xf32>
    %43 = math.exp %42 : vector<8x32xf32>
    %cst_32 = arith.constant 1.000000e+00 : f32
    %44 = vector.broadcast %cst_32 : f32 to vector<8x32xf32>
    %45 = arith.addf %44, %43 : vector<8x32xf32>
    %46 = arith.divf %44, %45 : vector<8x32xf32>
    %47 = arith.mulf %41, %46 : vector<8x32xf32>
    %48 = arith.mulf %19, %19 : vector<8x32xf32>
    %cst_33 = arith.constant dense<0.000000e+00> : vector<8x32xf32>
    %49 = tpu.matmul %48, %0, %cst_33 {dimension_numbers = #tpu.dot_dimension_numbers<[1], [0], [0], [1], [0, 0, 1, 1], [], []>} : vector<8x32xf32>, vector<32x32xf32>, vector<8x32xf32> -> vector<8x32xf32>
    %cst_34 = arith.constant 1.250000e-01 : f32
    %50 = vector.broadcast %cst_34 : f32 to vector<8x32xf32>
    %51 = arith.mulf %49, %50 : vector<8x32xf32>
    %cst_35 = arith.constant 9.99999997E-7 : f32
    %52 = vector.broadcast %cst_35 : f32 to vector<8x32xf32>
    %53 = arith.addf %51, %52 : vector<8x32xf32>
    %54 = math.rsqrt %53 : vector<8x32xf32>
    %55 = arith.mulf %19, %54 : vector<8x32xf32>
    %56 = vector.broadcast %8 : vector<1x32xf32> to vector<8x32xf32>
    %57 = arith.mulf %55, %56 : vector<8x32xf32>
    %58 = arith.negf %57 : vector<8x32xf32>
    %59 = math.exp %58 : vector<8x32xf32>
    %cst_36 = arith.constant 1.000000e+00 : f32
    %60 = vector.broadcast %cst_36 : f32 to vector<8x32xf32>
    %61 = arith.addf %60, %59 : vector<8x32xf32>
    %62 = arith.divf %60, %61 : vector<8x32xf32>
    %63 = arith.mulf %57, %62 : vector<8x32xf32>
    %64 = arith.mulf %27, %27 : vector<16x32xf32>
    %cst_37 = arith.constant dense<0.000000e+00> : vector<16x32xf32>
    %65 = tpu.matmul %64, %0, %cst_37 {dimension_numbers = #tpu.dot_dimension_numbers<[1], [0], [0], [1], [0, 0, 1, 1], [], []>} : vector<16x32xf32>, vector<32x32xf32>, vector<16x32xf32> -> vector<16x32xf32>
    %cst_38 = arith.constant 1.250000e-01 : f32
    %66 = vector.broadcast %cst_38 : f32 to vector<16x32xf32>
    %67 = arith.mulf %65, %66 : vector<16x32xf32>
    %cst_39 = arith.constant 9.99999997E-7 : f32
    %68 = vector.broadcast %cst_39 : f32 to vector<16x32xf32>
    %69 = arith.addf %67, %68 : vector<16x32xf32>
    %70 = math.rsqrt %69 : vector<16x32xf32>
    %71 = arith.mulf %27, %70 : vector<16x32xf32>
    %72 = vector.broadcast %9 : vector<1x32xf32> to vector<16x32xf32>
    %73 = arith.mulf %71, %72 : vector<16x32xf32>
    %74 = arith.negf %73 : vector<16x32xf32>
    %75 = math.exp %74 : vector<16x32xf32>
    %cst_40 = arith.constant 1.000000e+00 : f32
    %76 = vector.broadcast %cst_40 : f32 to vector<16x32xf32>
    %77 = arith.addf %76, %75 : vector<16x32xf32>
    %78 = arith.divf %76, %77 : vector<16x32xf32>
    %79 = arith.mulf %73, %78 : vector<16x32xf32>
    %cst_41 = arith.constant dense<0.000000e+00> : vector<32x32xf32>
    %80 = tpu.matmul %63, %23, %cst_41 {dimension_numbers = #tpu.dot_dimension_numbers<[0], [0], [1], [1], [0, 1, 1, 1], [], []>} : vector<8x32xf32>, vector<8x32xf32>, vector<32x32xf32> -> vector<32x32xf32>
    %cst_42 = arith.constant dense<0.000000e+00> : vector<32x32xf32>
    %81 = tpu.matmul %79, %31, %cst_42 {dimension_numbers = #tpu.dot_dimension_numbers<[0], [0], [1], [1], [0, 1, 1, 1], [], []>} : vector<16x32xf32>, vector<16x32xf32>, vector<32x32xf32> -> vector<32x32xf32>
    %82 = arith.addf %80, %81 : vector<32x32xf32>
    %83 = arith.mulf %82, %0 : vector<32x32xf32>
    %cst_43 = arith.constant dense<0.000000e+00> : vector<8x32xf32>
    %84 = tpu.matmul %47, %83, %cst_43 {dimension_numbers = #tpu.dot_dimension_numbers<[1], [0], [0], [1], [0, 0, 1, 1], [], []>} : vector<8x32xf32>, vector<32x32xf32>, vector<8x32xf32> -> vector<8x32xf32>
    %cst_44 = arith.constant dense<0.000000e+00> : vector<32xf32>
    %85 = vector.multi_reduction <add>, %63, %cst_44 [0] : vector<8x32xf32> to vector<32xf32>
    %86 = vector.shape_cast %85 : vector<32xf32> to vector<1x32xf32>
    %cst_45 = arith.constant dense<0.000000e+00> : vector<32xf32>
    %87 = vector.multi_reduction <add>, %79, %cst_45 [0] : vector<16x32xf32> to vector<32xf32>
    %88 = vector.shape_cast %87 : vector<32xf32> to vector<1x32xf32>
    %89 = arith.addf %86, %88 : vector<1x32xf32>
    %90 = vector.broadcast %89 : vector<1x32xf32> to vector<8x32xf32>
    %91 = arith.mulf %47, %90 : vector<8x32xf32>
    %cst_46 = arith.constant dense<0.000000e+00> : vector<8x32xf32>
    %92 = tpu.matmul %91, %0, %cst_46 {dimension_numbers = #tpu.dot_dimension_numbers<[1], [0], [0], [1], [0, 0, 1, 1], [], []>} : vector<8x32xf32>, vector<32x32xf32>, vector<8x32xf32> -> vector<8x32xf32>
    %cst_47 = arith.constant 9.99999997E-7 : f32
    %93 = vector.broadcast %cst_47 : f32 to vector<8x32xf32>
    %94 = arith.addf %92, %93 : vector<8x32xf32>
    %95 = tpu.reciprocal %94 : vector<8x32xf32> -> vector<8x32xf32>
    %96 = arith.mulf %84, %95 : vector<8x32xf32>
    %c0_48 = arith.constant 0 : index
    %c0_49 = arith.constant 0 : index
    %97 = vector.load %arg12[%c0_48, %c0_49] : memref<8x32xf32, #tpu.memory_space<vmem>>, vector<8x32xf32>
    tpu.vector_store %arg12[%c0_48, %c0_49], %96 {strides = array<i32>} : memref<8x32xf32, #tpu.memory_space<vmem>>, vector<8x32xf32>,
    %c0_50 = arith.constant 0 : index
    %c0_51 = arith.constant 0 : index
    %98 = vector.load %arg12[%c0_50, %c0_51] : memref<8x32xf32, #tpu.memory_space<vmem>>, vector<8x32xf32>
    %c0_52 = arith.constant 0 : index
    %c0_53 = arith.constant 0 : index
    %99 = vector.load %arg8[%c0_52, %c0_53] : memref<32x32xf32, #tpu.memory_space<vmem>>, vector<32x32xf32>
    %cst_54 = arith.constant dense<0.000000e+00> : vector<8x32xf32>
    %100 = tpu.matmul %98, %99, %cst_54 {dimension_numbers = #tpu.dot_dimension_numbers<[1], [0], [0], [1], [0, 0, 1, 1], [], []>} : vector<8x32xf32>, vector<32x32xf32>, vector<8x32xf32> -> vector<8x32xf32>
    %101 = vector.broadcast %6 : vector<1x32xf32> to vector<8x32xf32>
    %102 = arith.addf %100, %101 : vector<8x32xf32>
    %c0_55 = arith.constant 0 : index
    %c0_56 = arith.constant 0 : index
    %103 = vector.load %arg11[%c0_55, %c0_56] : memref<8x32xf32, #tpu.memory_space<vmem>>, vector<8x32xf32>
    tpu.vector_store %arg11[%c0_55, %c0_56], %102 {strides = array<i32>} : memref<8x32xf32, #tpu.memory_space<vmem>>, vector<8x32xf32>,
    return
  }
  func.func @transform_0(%arg0: i32) -> (i32, i32) {
    %c0_i32 = arith.constant 0 : i32
    %c0_i32_0 = arith.constant 0 : i32
    return %arg0, %c0_i32 : i32, i32
  }
  func.func @transform_1(%arg0: i32) -> (i32, i32) {
    %c0_i32 = arith.constant 0 : i32
    %c0_i32_0 = arith.constant 0 : i32
    return %arg0, %c0_i32 : i32, i32
  }
  func.func @transform_2(%arg0: i32) -> (i32, i32) {
    %c0_i32 = arith.constant 0 : i32
    %c0_i32_0 = arith.constant 0 : i32
    %c0_i32_1 = arith.constant 0 : i32
    return %c0_i32, %c0_i32_0 : i32, i32
  }
  func.func @transform_3(%arg0: i32) -> (i32, i32) {
    %c0_i32 = arith.constant 0 : i32
    %c0_i32_0 = arith.constant 0 : i32
    %c0_i32_1 = arith.constant 0 : i32
    return %c0_i32, %c0_i32_0 : i32, i32
  }
  func.func @transform_4(%arg0: i32) -> (i32, i32) {
    %c0_i32 = arith.constant 0 : i32
    %c0_i32_0 = arith.constant 0 : i32
    %c0_i32_1 = arith.constant 0 : i32
    return %c0_i32, %c0_i32_0 : i32, i32
  }
  func.func @transform_5(%arg0: i32) -> (i32, i32) {
    %c0_i32 = arith.constant 0 : i32
    %c0_i32_0 = arith.constant 0 : i32
    %c0_i32_1 = arith.constant 0 : i32
    return %c0_i32, %c0_i32_0 : i32, i32
  }
  func.func @transform_6(%arg0: i32) -> (i32, i32) {
    %c0_i32 = arith.constant 0 : i32
    %c0_i32_0 = arith.constant 0 : i32
    %c0_i32_1 = arith.constant 0 : i32
    return %c0_i32, %c0_i32_0 : i32, i32
  }
  func.func @transform_7(%arg0: i32) -> (i32, i32) {
    %c0_i32 = arith.constant 0 : i32
    %c0_i32_0 = arith.constant 0 : i32
    %c0_i32_1 = arith.constant 0 : i32
    return %c0_i32, %c0_i32_0 : i32, i32
  }
  func.func @transform_8(%arg0: i32) -> (i32, i32) {
    %c0_i32 = arith.constant 0 : i32
    %c0_i32_0 = arith.constant 0 : i32
    %c0_i32_1 = arith.constant 0 : i32
    return %c0_i32, %c0_i32_0 : i32, i32
  }
  func.func @transform_9(%arg0: i32) -> (i32, i32) {
    %c0_i32 = arith.constant 0 : i32
    %c0_i32_0 = arith.constant 0 : i32
    %c0_i32_1 = arith.constant 0 : i32
    return %c0_i32, %c0_i32_0 : i32, i32
  }
  func.func @transform_10(%arg0: i32) -> (i32, i32) {
    %c0_i32 = arith.constant 0 : i32
    %c0_i32_0 = arith.constant 0 : i32
    return %arg0, %c0_i32 : i32, i32
  }
}

</mosaic_0001>

<bundles_post_ra>
// kernel: tpu_custom_call.1
= control target key start
LH: loop header
LB: loop body
LE: loop exit
PB: predicated region body
PF: predicated region fallthrough
CT: control target
= control target key end

     0   :  { %s2431_s0 = inlined_call_operand.hbm [shape: f32[16,32], index: 0, kind: input, shape index: {}]   ;;  %s2432_s1 = inlined_call_operand.hbm [shape: f32[32,32], index: 1, kind: input, shape index: {}]   ;;  %s2433_s2 = inlined_call_operand.hbm [shape: f32[32,32], index: 2, kind: input, shape index: {}]   ;;  %s2434_s3 = inlined_call_operand.hbm [shape: f32[32,32], index: 3, kind: input, shape index: {}]   ;;  %s2435_s4 = inlined_call_operand.hbm [shape: f32[32,32], index: 4, kind: input, shape index: {}]   ;;  %s2436_s5 = inlined_call_operand.hbm [shape: f32[32,32], index: 5, kind: input, shape index: {}]   ;;  %s2437_s6 = inlined_call_operand.hbm [shape: f32[32,32], index: 6, kind: input, shape index: {}]   ;;  %s2438_s7 = inlined_call_operand.hbm [shape: f32[32,32], index: 7, kind: input, shape index: {}]   ;;  %s2439_s8 = inlined_call_operand.hbm [shape: f32[9,32], index: 8, kind: input, shape index: {}]   ;;  %s2440_s9 = inlined_call_operand.hbm [shape: f32[32,32], index: 9, kind: input, shape index: {}]   ;;  %s2441_s10 = inlined_call_operand.hbm [shape: f32[16,32], index: 10, kind: output, shape index: {}]  }
   0x1   :  { %2444 = sst [smem:[#allocation30_spill]] %s2433_s2 }
   0x2   :  { %2445 = sst [smem:[#allocation31_spill]] %s2434_s3 }
   0x3   :  { %2446 = sst [smem:[#allocation32_spill]] %s2435_s4 }
   0x4   :  { %2447 = sst [smem:[#allocation33_spill]] %s2436_s5 }
   0x5   :  { %2448 = sst [smem:[#allocation34_spill]] %s2437_s6 }
   0x6   :  { %2449 = sst [smem:[#allocation35_spill]] %s2438_s7 }
   0x7   :  { %2450 = sst [smem:[#allocation36_spill]] %s2439_s8 }
   0x8   :  { %2451 = sst [smem:[#allocation37_spill]] %s2440_s9 }
   0x9   :  { %15 = vsyncpa [#allocation4], 0 }
   0xa   :  { %17 = vsyncpa [#allocation4 + $0x1], 0 }
   0xb   :  { %18 = vsyncpa [#allocation7], 0 }
   0xc   :  { %20 = vsyncpa [#allocation7 + $0x1], 0 }
   0xd   :  { %21 = vsyncpa [#allocation10], 0 }
   0xe   :  { %22 = vsyncpa [#allocation13], 0 }
   0xf   :  { %23 = vsyncpa [#allocation16], 0 }
  0x10   :  { %24 = vsyncpa [#allocation19], 0 }
  0x11   :  { %25 = vsyncpa [#allocation5], 0 }
  0x12   :  { %27 = vsyncpa [#allocation5 + $0x1], 0  ;;  %s2060_s13 = smov 0   ;;  %s2062_s14 = smov 0  }
  0x13   :  { %s2064_s15 = smov 0   ;;  %s2066_s16 = smov 0  }
  0x14 LB: > { %s2452_s2 = sld [smem:[#allocation30_spill]]  ;;  %s2084_s20 = sadd.s32 4294967295, %s1993_s16   ;;  %s1993_s16 = sphi %s2066_s16, %s2477_s16   ;;  %s1989_s15 = sphi %s2064_s15, %s2476_s15   ;;  %s1985_s14 = sphi %s2062_s14, %s2475_s14   ;;  %s1981_s13 = sphi %s2060_s13, %s2474_s13  }
  0x15   : > { %p1375_p0 = scmp.ge.s32.totalorder %s1993_s16, 1  ;;  %p54_p1 = scmp.eq.s32.totalorder %s2084_s20, 0 }
  0x16   : > { %p284_p2 = scmp.lt.s32.totalorder %s1993_s16, 3  ;;  %s1995_s22 = smov [#allocation8]  }
  0x17   : > { %s297_s23 = sshll.u32 %s1995_s22, 4  ;;  %s2454_s3 = sld [smem:[#allocation31_spill]]  ;;  %s298_s23 = int_to_ptr.vmem [resolvable:$true] %s297_s23 }
  0x18   : > { %p2089_p3 = pnand %p1375_p0, %p284_p2  ;;  %s2456_s5 = sld [smem:[#allocation33_spill]] }
  0x19   : > { %s1996_s11 = smov [#allocation9]   ;;  %s2442_s17 = smov 128  }
  0x1a   : > { %s295_s19 = sshll.u32 %s2452_s2, 4  ;;  %p1471_p4 = pneg %p2089_p3  ;;  %s296_s19 = int_to_ptr.hbm [resolvable:$true] %s295_s19 }
  0x1b   : > { %s311_s12 = sshll.u32 %s1996_s11, 4  ;;  %s2443_s18 = smov 8   ;;  %s312_s12 = int_to_ptr.vmem [resolvable:$true] %s311_s12 }
  0x1c   : > { %p2101_p6 = pnand %p1471_p4, %p54_p1  ;;  %s2457_s7 = sld [smem:[#allocation35_spill]] }
  0x1d   : > { %s309_s26 = sshll.u32 %s2454_s3, 4  ;;  %s1999_s28 = smov [#allocation12]   ;;  %s310_s26 = int_to_ptr.hbm [resolvable:$true] %s309_s26 }
  0x1e   : > { %s337_s30 = sshll.u32 %s2456_s5, 4  ;;  %s339_s29 = sshll.u32 %s1999_s28, 4  ;;  %s338_s30 = int_to_ptr.hbm [resolvable:$true] %s337_s30  ;;  %s340_s29 = int_to_ptr.vmem [resolvable:$true] %s339_s29 }
  0x1f   : > { %1474 = dma.hbm_to_vmem [thread:$0]  (!%p2101_p6), %s296_s19, 512, %s298_s23, [#allocation7], %s2442_s17, %s2442_s17, %s2443_s18  }
  0x20   : > { %1477 = dma.hbm_to_vmem [thread:$0]  (!%p2101_p6), %s310_s26, 512, %s312_s12, [#allocation10], %s2442_s17, %s2442_s17, %s2443_s18  }
  0x21   : > { %1483 = dma.hbm_to_vmem [thread:$0]  (!%p2101_p6), %s338_s30, 512, %s340_s29, [#allocation13], %s2442_s17, %s2442_s17, %s2443_s18  }
  0x22   : > { %s365_s25 = sshll.u32 %s2457_s7, 4  ;;  %s2000_s19 = smov [#allocation15]   ;;  %s366_s25 = int_to_ptr.hbm [resolvable:$true] %s365_s25 }
  0x23   : > { %s367_s23 = sshll.u32 %s2000_s19, 4  ;;  %s2458_s4 = sld [smem:[#allocation32_spill]]  ;;  %s368_s23 = int_to_ptr.vmem [resolvable:$true] %s367_s23 }
  0x24   : > { %1489 = dma.hbm_to_vmem [thread:$0]  (!%p2101_p6), %s366_s25, 512, %s368_s23, [#allocation16], %s2442_s17, %s2442_s17, %s2443_s18  }
  0x25   : > { %s2459_s6 = sld [smem:[#allocation34_spill]]  ;;  %s2001_s28 = smov [#allocation11]  }
  0x26   : > { %s325_s30 = sshll.u32 %s2001_s28, 4  ;;  %s2002_s2 = smov [#allocation14]   ;;  %s326_s30 = int_to_ptr.vmem [resolvable:$true] %s325_s30 }
  0x27   : > { %s353_s29 = sshll.u32 %s2002_s2, 4  ;;  %s2460_s8 = sld [smem:[#allocation36_spill]]  ;;  %s354_s29 = int_to_ptr.vmem [resolvable:$true] %s353_s29 }
  0x28   : > { %s2461_s9 = sld [smem:[#allocation37_spill]]  ;;  %s2003_s22 = smov [#allocation17]  }
  0x29   : > { %s323_s26 = sshll.u32 %s2458_s4, 4  ;;  %s381_s28 = sshll.u32 %s2003_s22, 4  ;;  %s324_s26 = int_to_ptr.hbm [resolvable:$true] %s323_s26  ;;  %s382_s28 = int_to_ptr.vmem [resolvable:$true] %s381_s28 }
  0x2a   : > { %1480 = dma.hbm_to_vmem [thread:$0]  (!%p2101_p6), %s324_s26, 512, %s326_s30, [#allocation10], %s2442_s17, %s2442_s17, %s2443_s18  }
  0x2b   : > { %s351_s24 = sshll.u32 %s2459_s6, 4  ;;  %s1374_s2 = sadd.s32 4294967294, %s1993_s16   ;;  %s352_s24 = int_to_ptr.hbm [resolvable:$true] %s351_s24 }
  0x2c   : > { %1486 = dma.hbm_to_vmem [thread:$0]  (!%p2101_p6), %s352_s24, 512, %s354_s29, [#allocation13], %s2442_s17, %s2442_s17, %s2443_s18  }
  0x2d   : > { %s379_s23 = sshll.u32 %s2460_s8, 4  ;;  %s2004_s24 = smov [#allocation18]   ;;  %s380_s23 = int_to_ptr.hbm [resolvable:$true] %s379_s23 }
  0x2e   : > { %s393_s12 = sshll.u32 %s2461_s9, 4  ;;  %s395_s30 = sshll.u32 %s2004_s24, 4  ;;  %s394_s12 = int_to_ptr.hbm [resolvable:$true] %s393_s12  ;;  %s396_s30 = int_to_ptr.vmem [resolvable:$true] %s395_s30 }
  0x2f   : > { %1492 = dma.hbm_to_vmem [thread:$0]  (!%p2101_p6), %s380_s23, 256, %s382_s28, [#allocation16], %s2442_s17, %s2442_s17, %s2443_s18  }
  0x30   : > { %1495 = dma.hbm_to_vmem [thread:$0]  (!%p2101_p6), %s394_s12, 512, %s396_s30, [#allocation19], %s2442_s17, %s2442_s17, %s2443_s18  }
  0x31   : > { %s2165_s29 = sadd.s32 1, %s1993_s16   ;;  %s40_s25 = sadd.s32 1, %s1989_s15 }
  0x32   : > { %s37_s19 = ssub.s32 %s1993_s16, %s2165_s29  ;;  %p47_p8 = scmp.ne.s32.totalorder %s1989_s15, %s1985_s14 }
  0x33   : > { %p38_p7 = scmp.eq.s32.totalorder %s37_s19, 0  ;;  %p48_p9 = scmp.eq.s32.totalorder %s1993_s16, 0 }
  0x34   : > { %p53_p10 = scmp.ne.s32.totalorder %s1985_s14, %s1981_s13  ;;  %p271_p13 = scmp.eq.s32.totalorder %s2084_s20, 1 }
  0x35   : > { %s2176_s23 = scalar_select %p38_p7, %s1989_s15, %s40_s25  }
  0x36   : > { %p2178_p11 = por %p48_p9, %p47_p8  ;;  %p2184_p12 = por %p54_p1, %p53_p10 }
  0x37   : > { %2462 = sst [smem:[#allocation29_spill]] %s2176_s23  ;;  %p277_p0 = scmp.eq.s32.totalorder %s1374_s2, 1 }
  0x38   : > { %p1515_p2 = scmp.lt.s32.totalorder %s1993_s16, 2  ;;  %s2191_s26 = sand.u32 1, %s1989_s15  }
  0x39   : > { %p2193_p4 = por %p271_p13, %p47_p8  ;;  %p2197_p6 = por %p277_p0, %p53_p10 }
  0x3a   : > { %s1385_s28 = sshll.u32 %s2191_s26, 3  ;;  %s1386_s24 = sshll.u32 %s1993_s16, 3 }
  0x3b   : > { %s417_s2 = scalar_lea.hbm %s2431_s0, %s1386_s24  ;;  %s413_s25 = scalar_lea.vmem [#allocation3], %s1385_s28 }
  0x3c   : > { %s421_s17 = sshll.u32 %s413_s25, 4  ;;  %s419_s18 = sshll.u32 %s417_s2, 4  ;;  %s422_s17 = int_to_ptr.vmem [resolvable:$true] %s421_s17  ;;  %s420_s18 = int_to_ptr.hbm [resolvable:$true] %s419_s18 }
  0x3d   : > { %p2208_p7 = pnand %p1515_p2, %p2178_p11  ;;  %s1387_s4 = sshll.u32 %s2191_s26, 4 }
  0x3e   : > { %s428_s5 = sand.u32 1, %s1993_s16   ;;  %s410_s6 = scalar_lea.sflag [#allocation4], %s2191_s26 }
  0x3f   : > { %s1843_s7 = sshra.s32 %s420_s18, 4  ;;  %p1847_p9 = pneg %p2208_p7  ;;  %s1844_s7 = int_to_ptr.hbm [resolvable:$true] %s1843_s7 }
  0x40   : > { %s1845_s8 = scalar_lea.hbm %s1844_s7, 8  ;;  %s1850_s24 = scalar_lea.hbm %s2431_s0, 16 }
  0x41   : > { %p1846_p8 = scmp.ne.s32.totalorder %s1844_s7, %s1845_s8  ;;  %p1851_p11 = scmp.lt.s32.totalorder %s1844_s7, %s2431_s0 }
  0x42   : > { %p1852_p0 = scmp.lt.s32.totalorder %s1850_s24, %s1845_s8 }
  0x43   : > { %p1848_p10 = pnand %p1847_p9, %p1846_p8 }
  0x44   : > { %p1853_p2 = por %p1852_p0, %p1851_p11 }
  0x45   : > { %p1849_p13 = pneg %p1848_p10 }
  0x47   : > { %p1854_p5 = pnand %p1853_p2, %p1849_p13 }
  0x49   : > { %1857 = shalt.err (!%p1854_p5)
}
  0x4a   : > { %1499 = dma.hbm_to_vmem [thread:$0]  (!%p2208_p7), %s420_s18, 128, %s422_s17, %s410_s6  }
  0x4b   : > { %s432_s26 = scalar_lea.vmem [#allocation6], %s1387_s4  ;;  %s1432_s25 = sshll.u32 %s1993_s16, 4 }
  0x4c   : > { %s440_s2 = sshll.u32 %s432_s26, 4  ;;  %s437_s28 = scalar_lea.hbm %s2432_s1, %s1432_s25  ;;  %s441_s2 = int_to_ptr.vmem [resolvable:$true] %s440_s2 }
  0x4d   : > { %s438_s23 = sshll.u32 %s437_s28, 4  ;;  %s429_s7 = scalar_lea.sflag [#allocation7], %s428_s5  ;;  %s439_s23 = int_to_ptr.hbm [resolvable:$true] %s438_s23 }
  0x4e   : > { %s1873_s8 = sshra.s32 %s439_s23, 4  ;;  %s1880_s17 = scalar_lea.hbm %s2432_s1, 32  ;;  %s1874_s8 = int_to_ptr.hbm [resolvable:$true] %s1873_s8 }
  0x4f   : > { %s1875_s24 = scalar_lea.hbm %s1874_s8, 16  ;;  %p1881_p13 = scmp.lt.s32.totalorder %s1874_s8, %s2432_s1 }
  0x50   : > { %p1876_p5 = scmp.ne.s32.totalorder %s1874_s8, %s1875_s24  ;;  %p1882_p11 = scmp.lt.s32.totalorder %s1880_s17, %s1875_s24 }
  0x52   : > { %p1878_p8 = pnand %p1876_p5, %p1847_p9  ;;  %p1883_p0 = por %p1882_p11, %p1881_p13 }
  0x54   : > { %p1879_p10 = pneg %p1878_p8 }
  0x56   : > { %p1884_p2 = pnand %p1883_p0, %p1879_p10 }
  0x58   : > { %1887 = shalt.err (!%p1884_p2)
}
  0x59   : > { %s2468_s5 = smov 8   ;;  %s2469_s9 = smov 128  }
  0x5a   : > { %1502 = dma.hbm_to_vmem [thread:$0]  (!%p2208_p7), %s439_s23, 256, %s441_s2, %s429_s7, %s2469_s9, %s2469_s9, %s2468_s5  }
  0x5b   : > { %452 = sbr.rel (%p2089_p3) target bundleno = 1065 (0x429), region = 60  ;;  %s2249_s19 = sand.u32 (!%p2089_p3), 1, %s1985_s14  }
  0x5c   : > { %s1391_s26 = sshll.u32 (!%p2089_p3), %s2249_s19, 3  ;;  %s455_s25 = scalar_lea.sflag (!%p2089_p3), [#allocation4], %s2249_s19 }
  0x5d   : > { %s2255_s27 = scalar_lea.vmem (!%p2089_p3), [#allocation3], %s1391_s26 }
  0x60   : > { %1948 = dma.done.wait (%p2184_p12), %s455_s25, 128  }
  0x61   : > { %1950 = vsyncadd (%p2184_p12), %s455_s25, 4294967168  ;;  %s464_s3 = sand.u32 1, %s2084_s20   ;;  %s1392_s21 = sshll.u32 %s2249_s19, 4 }
  0x62   : > { %s465_s23 = scalar_lea.sflag [#allocation7], %s464_s3  ;;  %s2263_s2 = scalar_lea.vmem [#allocation6], %s1392_s21 }
  0x63   : > { %1952 = dma.done.wait (%p2184_p12), %s465_s23, 256  }
  0x64   : > { %1954 = vsyncadd (%p2184_p12), %s465_s23, 4294967040 }
  0x65   : > { %1956 = dma.done.wait (%p54_p1), [#allocation7], 512  }
  0x66   : > { %1958 = vsyncadd (%p54_p1), [#allocation7], 4294966784 }
  0x67   : > { %1960 = dma.done.wait (%p54_p1), [#allocation10], 1024  }
  0x68   : > { %1962 = vsyncadd (%p54_p1), [#allocation10], 4294966272 }
  0x69   : > { %1964 = dma.done.wait (%p54_p1), [#allocation13], 1024  }
  0x6a   : > { %1966 = vsyncadd (%p54_p1), [#allocation13], 4294966272 }
  0x6b   : > { %1968 = dma.done.wait (%p54_p1), [#allocation16], 768  }
  0x6c   : > { %1970 = vsyncadd (%p54_p1), [#allocation16], 4294966528 }
  0x6d   : > { %1972 = dma.done.wait (%p54_p1), [#allocation19], 512  }
  0x6e   : > { %1974 = vsyncadd (%p54_p1), [#allocation19], 4294966784  ;;  %v571_v0 = vld [vmem:[#allocation8 + $0x18] sm:$0xff]  ;;  %v570_v2 = vld [vmem:[#allocation8 + $0x10] sm:$0xff]  ;;  %vm573_vm0 = vcmask 261120   ;;  %s1429_s11 = sshll.u32 %s2084_s20, 3 }
  0x6f   : > { %v600_v1 = vld [vmem:[#allocation9 + $0x18] sm:$0xff]  ;;  %589 = vmatpush.msra.mxu0 %v571_v0  ;;  %v599_v3 = vld [vmem:[#allocation9 + $0x10] sm:$0xff]  ;;  %v569_v5 = vld [vmem:[#allocation8 + $0x8] sm:$0xff]  ;;  %s1200_s8 = scalar_lea.hbm %s2441_s10, %s1429_s11  ;;  %s550_s24 = scalar_lea.vmem [#allocation20], %s1391_s26 }
  0x70   : > { %614 = vmatpush.msra.mxu1 %v600_v1  ;;  %v650_v4 = vld [vmem:[#allocation12 + $0x18] sm:$0xff]  ;;  %v598_v6 = vld [vmem:[#allocation9 + $0x8] sm:$0xff]  ;;  %v649_v7 = vld [vmem:[#allocation12 + $0x10] sm:$0xff]  ;;  %s1202_s6 = sshll.u32 %s550_s24, 4  ;;  %s1204_s4 = sshll.u32 %s1200_s8, 4  ;;  %s1203_s6 = int_to_ptr.vmem [resolvable:$true] %s1202_s6  ;;  %s1205_s4 = int_to_ptr.hbm [resolvable:$true] %s1204_s4 }
  0x71   : > { %670 = vmatpush.msra.mxu3 %v650_v4  ;;  %590 = vmatpush.msra.mxu0 %v570_v2  ;;  %v648_v8 = vld [vmem:[#allocation12 + $0x8] sm:$0xff]  ;;  %v568_v9 = vld [vmem:[#allocation8] sm:$0xff]  ;;  %v565_v11 = vld [vmem:[%s2255_s27] sm:$0xff]  ;;  %s1190_s17 = scalar_lea.sflag [#allocation5], %s2249_s19  ;;  %s1917_s18 = sshra.s32 %s1205_s4, 4  ;;  %s1918_s18 = int_to_ptr.hbm [resolvable:$true] %s1917_s18 }
  0x72   : > { %615 = vmatpush.msra.mxu1 %v599_v3  ;;  %v597_v10 = vld [vmem:[#allocation9] sm:$0xff]  ;;  %v625_v14 = vld [vmem:[#allocation11 + $0x18] sm:$0xff]  ;;  %v624_v15 = vld [vmem:[#allocation11 + $0x10] sm:$0xff]  ;;  %s1919_s20 = scalar_lea.hbm %s1918_s18, 8  ;;  %s1923_s9 = scalar_lea.hbm %s2441_s10, 16 }
  0x73   : > { %671 = vmatpush.msra.mxu3 %v649_v7  ;;  %591 = vmatpush.msra.mxu0 %v569_v5  ;;  %v647_v12 = vld [vmem:[#allocation12] sm:$0xff]  ;;  %v623_v16 = vld [vmem:[#allocation11 + $0x8] sm:$0xff]  ;;  %v2311_v21 = vld [vmem:[#allocation18 + $0x8] sm:$0xff]  ;;  %p1920_p1 = scmp.ne.s32.totalorder %s1918_s18, %s1919_s20  ;;  %p1924_p7 = scmp.lt.s32.totalorder %s1918_s18, %s2441_s10 }
  0x74   : > { %616 = vmatpush.msra.mxu1 %v598_v6  ;;  %v2291_v13 = vld [vmem:[%s2263_s2] sm:$0xff]  ;;  %639 = vmatpush.msra.mxu2 %v625_v14  ;;  %v2293_v17 = vld [vmem:[#allocation18 + $0x18] sm:$0xff]  ;;  %p1925_p9 = scmp.lt.s32.totalorder %s1923_s9, %s1919_s20 }
  0x75   : > { %672 = vmatpush.msra.mxu3 %v648_v8  ;;  %592 = vmatpush.msra.mxu0 %v568_v9  ;;  %v622_v18 = vld [vmem:[#allocation11] sm:$0xff]  ;;  %v2302_v19 = vld [vmem:[%s2263_s2 + $0x8] sm:$0xff]  ;;  %v2315_v22 = vld [vmem:[#allocation18] sm:$0xff]  ;;  %p1921_p3 = pnand %p1920_p1, %p2193_p4 }
  0x76   : > { %617 = vmatpush.msra.mxu1 %v597_v10  ;;  %1402 = vmatmul.msk.f32.vlgmr.msra.gmra.mxu0 %vm573_vm0, %v565_v11  ;;  %v2307_v20 = vld [vmem:[#allocation18 + $0x10] sm:$0xff]  ;;  %p1926_p5 = por %p1925_p9, %p1924_p7 }
  0x77   : > { %1403 = vmatmul.msk.f32.vlgmr.msra.gmra.mxu1 %vm573_vm0, %v565_v11  ;;  %673 = vmatpush.msra.mxu3 %v647_v12  ;;  %v1568_v23 = vld [vmem:[#allocation17] ss:$0 sm:$0xff]  ;;  %v1569_v24 = vld [vmem:[#allocation17 + $0x1] ss:$0 sm:$0xff]  ;;  %v1570_v31 = vld [vmem:[#allocation17 + $0x3] ss:$0 sm:$0xff]  ;;  %p1922_p12 = pneg %p1921_p3 }
  0x78   : > { %640 = vmatpush.msra.mxu2 %v624_v15  ;;  %1405 = vmatmul.msk.f32.vlgmr.msra.gmra.mxu3 %vm573_vm0, %v2291_v13  ;;  %v1571_v34 = vld [vmem:[#allocation17 + $0x2] ss:$0 sm:$0xff]  ;;  %v1573_v8 = vld [vmem:[#allocation17 + $0x7] ss:$0 sm:$0xff]  ;;  %v1574_v15 = vld [vmem:[#allocation17 + $0x8] ss:$0 sm:$0xff] }
  0x79   : > { %725 = vmatpush.msrb.mxu1 %v2293_v17  ;;  %p1927_p8 = pnand %p1926_p5, %p1922_p12 }
  0x7a   : > { %641 = vmatpush.msra.mxu2 %v623_v16 }
  0x7b   : > { %726 = vmatpush.msrb.mxu1 %v2307_v20 }
  0x7c   : > { %642 = vmatpush.msra.mxu2 %v622_v18 }
  0x7d   : > { %1404 = vmatmul.msk.f32.vlgmr.msra.gmra.mxu2 %vm573_vm0, %v565_v11  ;;  %727 = vmatpush.msrb.mxu1 %v2311_v21 }
  0x7e   : > { %784 = vmatpush.msrb.mxu2 %v2293_v17 }
  0x7f   : > { %728 = vmatpush.msrb.mxu1 %v2315_v22 }
  0x80   : > { %1406 = vmatmul.msk.f32.gmra.mxu3 %vm573_vm0, %v2302_v19  ;;  %785 = vmatpush.msrb.mxu2 %v2307_v20 }
  0x81   : > { %847 = vmatpush.msra.mxu1 %v2293_v17 }
  0x82   : > { %786 = vmatpush.msrb.mxu2 %v2311_v21 }
  0x83   : > { %848 = vmatpush.msra.mxu1 %v2307_v20 }
  0x84   : > { %787 = vmatpush.msrb.mxu2 %v2315_v22 }
  0x85   : > { %849 = vmatpush.msra.mxu1 %v2311_v21 }
  0x87   : > { %850 = vmatpush.msra.mxu1 %v2315_v22 }
  0xf3   : > { %v594_v25 = vpop.f32.mrf.mxu0 }
  0xf4   : > { %v619_v26 = vpop.f32.mrf.mxu1  ;;  %v2323_v27 = vadd.f32 %v1568_v23, %v594_v25 }
  0xf5   : > { %v2325_v28 = vadd.f32 %v1569_v24, %v619_v26  ;;  %v1572_v24 = vld [vmem:[#allocation17 + $0x6] ss:$0 sm:$0xff] }
  0xf6   : > { %v709_v29 = vmul.f32 %v2323_v27, %v2323_v27 }
  0xf7   : > { %v768_v30 = vmul.f32 %v2325_v28, %v2325_v28 }
  0xf8   : > { %1409 = vmatmul.msk.f32.vlgmr.msrb.gmra.mxu1 %vm573_vm0, %v709_v29 }
  0xf9   : > { %1411 = vmatmul.msk.f32.vlgmr.msrb.gmra.mxu2 %vm573_vm0, %v768_v30 }
  0xfb   : > { %v675_v32 = vpop.f32.mrf.mxu3 }
  0xfc   : > { %v2333_v33 = vadd.f32 %v1570_v31, %v675_v32 }
  0xfe   : > { %v827_v35 = vmul.f32 %v2333_v33, %v2333_v33 }
 0x100   : > { %v644_v36 = vpop.f32.mrf.mxu2  ;;  %1413 = vmatmul.msk.f32.vlgmr.msra.gmra.mxu1 %vm573_vm0, %v827_v35 }
 0x101   : > { %v645_v37 = vadd.f32 %v1571_v34, %v644_v36 }
 0x103   : > { %1061 = vmatpush.msrb.mxu3 %v645_v37  ;;  %v678_v38 = vpop.f32.mrf.mxu3 }
 0x104   : > { %v2338_v39 = vadd.f32 %v1570_v31, %v678_v38 }
 0x106   : > { %v828_v40 = vmul.f32 %v2338_v39, %v2338_v39 }
 0x108   : > { %1414 = vmatmul.msk.f32.gmra.mxu1 %vm573_vm0, %v828_v40 }
 0x175   : > { %v730_v41 = vpop.f32.mrf.mxu1 }
 0x176   : > { %v733_v42 = vmul.f32 0.125, %v730_v41  ;;  %v684_v41 = vld [vmem:[#allocation14 + $0x18] sm:$0xff] }
 0x177   : > { %698 = vmatpush.msrb.mxu0 %v684_v41 }
 0x178   : > { %v734_v43 = vadd.f32 1e-06, %v733_v42 }
 0x17a   : > { %1577 = vrsqrt.f32 %v734_v43  ;;  %vm741_vm3 = vweird.f32 %v734_v43 }
 0x17c   : > { %v789_v44 = vpop.f32.mrf.mxu2 }
 0x17d   : > { %v792_v45 = vmul.f32 0.125, %v789_v44  ;;  %v852_v46 = vpop.f32.mrf.mxu1  ;;  %v683_v44 = vld [vmem:[#allocation14 + $0x10] sm:$0xff] }
 0x17e   : > { %v858_v48 = vmul.f32 0.125, %v852_v46  ;;  %699 = vmatpush.msrb.mxu0 %v683_v44  ;;  %v682_v46 = vld [vmem:[#allocation14 + $0x8] sm:$0xff] }
 0x17f   : > { %v793_v47 = vadd.f32 1e-06, %v792_v45 }
 0x180   : > { %v1578_v49 = vpop.eup %1577  ;;  %v860_v50 = vadd.f32 1e-06, %v858_v48  ;;  %700 = vmatpush.msrb.mxu0 %v682_v46 }
 0x181   : > { %1579 = vrsqrt.f32 %v793_v47  ;;  %v736_v51 = vmul.f32 %v1578_v49, %v734_v43  ;;  %vm742_vm1 = vweird.f32 %v1578_v49  ;;  %vm800_vm5 = vweird.f32 %v793_v47 }
 0x182   : > { %1581 = vrsqrt.f32 %v860_v50  ;;  %vm2343_vm4 = vmor %vm741_vm3, %vm742_vm1  ;;  %vm868_vm8 = vweird.f32 %v860_v50 }
 0x183   : > { %v737_v52 = vmul.f32 %v1578_v49, %v736_v51 }
 0x185   : > { %v738_v53 = vmul.f32 0.5, %v737_v52  ;;  %v855_v54 = vpop.f32.mrf.mxu1 }
 0x186   : > { %v859_v56 = vmul.f32 0.125, %v855_v54 }
 0x187   : > { %v1580_v55 = vpop.eup %1579  ;;  %v739_v60 = vsub.f32 1.5, %v738_v53 }
 0x188   : > { %v795_v57 = vmul.f32 %v1580_v55, %v793_v47  ;;  %v1582_v58 = vpop.eup %1581  ;;  %v861_v59 = vadd.f32 1e-06, %v859_v56  ;;  %vm801_vm2 = vweird.f32 %v1580_v55  ;;  %v681_v47 = vld [vmem:[#allocation14] sm:$0xff] }
 0x189   : > { %v863_v62 = vmul.f32 %v1582_v58, %v860_v50  ;;  %v740_v1 = vmul.f32 %v1578_v49, %v739_v60  ;;  %vm869_vm6 = vweird.f32 %v1582_v58  ;;  %vm802_vm7 = vmor %vm800_vm5, %vm801_vm2  ;;  %701 = vmatpush.msrb.mxu0 %v681_v47 }
 0x18a   : > { %v796_v61 = vmul.f32 %v1580_v55, %v795_v57  ;;  %1583 = vrsqrt.f32 %v861_v59  ;;  %vm870_vm9 = vmor %vm868_vm8, %vm869_vm6  ;;  %vm878_vm11 = vweird.f32 %v861_v59  ;;  %1407 = vmatmul.msk.f32.vlgmr.msrb.gmra.mxu0 %vm573_vm0, %v2291_v13 }
 0x18b   : > { %v864_v0 = vmul.f32 %v1582_v58, %v863_v62  ;;  %v744_v9 = vsel %vm2343_vm4, %v1578_v49, %v740_v1 }
 0x18c   : > { %v797_v63 = vmul.f32 0.5, %v796_v61  ;;  %v745_v23 = vmul.f32 %v744_v9, %v2323_v27 }
 0x18d   : > { %v865_v3 = vmul.f32 0.5, %v864_v0 }
 0x18e   : > { %v798_v2 = vsub.f32 1.5, %v797_v63  ;;  %v2357_v34 = vmul.f32 %v1572_v24, %v745_v23 }
 0x18f   : > { %v866_v6 = vsub.f32 1.5, %v865_v3 }
 0x190   : > { %v799_v5 = vmul.f32 %v1580_v55, %v798_v2  ;;  %v1584_v7 = vpop.eup %1583  ;;  %v1410_v36 = vmul.f32 -1.442695, %v2357_v34 }
 0x191   : > { %v867_v10 = vmul.f32 %v1582_v58, %v866_v6  ;;  %v873_v11 = vmul.f32 %v1584_v7, %v861_v59  ;;  %vm879_vm10 = vweird.f32 %v1584_v7 }
 0x192   : > { %v803_v12 = vsel %vm802_vm7, %v1580_v55, %v799_v5  ;;  %vm880_vm12 = vmor %vm878_vm11, %vm879_vm10  ;;  %1408 = vmatmul.msk.f32.gmra.mxu0 %vm573_vm0, %v2302_v19 }
 0x193   : > { %v804_v14 = vmul.f32 %v803_v12, %v2325_v28  ;;  %v874_v16 = vmul.f32 %v1584_v7, %v873_v11  ;;  %v871_v18 = vsel %vm870_vm9, %v1582_v58, %v867_v10 }
 0x194   : > { %v882_v26 = vmul.f32 %v871_v18, %v2333_v33 }
 0x195   : > { %v2351_v25 = vmul.f32 %v1573_v8, %v804_v14  ;;  %v875_v29 = vmul.f32 0.5, %v874_v16 }
 0x196   : > { %v2355_v31 = vmul.f32 %v1574_v15, %v882_v26 }
 0x197   : > { %v1412_v30 = vmul.f32 -1.442695, %v2351_v25  ;;  %v876_v32 = vsub.f32 1.5, %v875_v29 }
 0x198   : > { %v1415_v28 = vmul.f32 -1.442695, %v2355_v31 }
 0x199   : > { %1585 = vpow2.f32 %v1412_v30  ;;  %v877_v35 = vmul.f32 %v1584_v7, %v876_v32 }
 0x19a   : > { %1587 = vpow2.f32 %v1415_v28 }
 0x19b   : > { %v881_v27 = vsel %vm880_vm12, %v1584_v7, %v877_v35  ;;  %1589 = vpow2.f32 %v1410_v36 }
 0x19c   : > { %v883_v33 = vmul.f32 %v881_v27, %v2338_v39 }
 0x19e   : > { %v2362_v38 = vmul.f32 %v1574_v15, %v883_v33 }
 0x19f   : > { %v1586_v37 = vpop.eup %1585 }
 0x1a0   : > { %v810_v40 = vadd.f32 1.0, %v1586_v37  ;;  %v1588_v42 = vpop.eup %1587  ;;  %v1416_v43 = vmul.f32 -1.442695, %v2362_v38 }
 0x1a1   : > { %v893_v45 = vadd.f32 1.0, %v1588_v42  ;;  %v1590_v39 = vpop.eup %1589 }
 0x1a2   : > { %1591 = vrcp.f32 %v810_v40  ;;  %v2367_v53 = vadd.f32 1.0, %v1590_v39  ;;  %v822_v55 = vand.u32 2147483648, %v810_v40  ;;  %v820_v58 = vand.u32 2147483647, %v810_v40 }
 0x1a3   : > { %1593 = vpow2.f32 %v1416_v43  ;;  %vm816_vm14 = vweird.f32 %v810_v40  ;;  %v906_v61 = vand.u32 2147483648, %v893_v45  ;;  %v904_v63 = vand.u32 2147483647, %v893_v45 }
 0x1a4   : > { %1595 = vrcp.f32 %v893_v45  ;;  %v823_v13 = vor.u32 1.1754944e-38, %v822_v55  ;;  %vm821_vm2 = vcmp.eq.f32.partialorder %v820_v58, 8.507059e+37  ;;  %vm900_vm3 = vweird.f32 %v893_v45 }
 0x1a5   : > { %v907_v5 = vor.u32 1.1754944e-38, %v906_v61  ;;  %vm905_vm5 = vcmp.eq.f32.partialorder %v904_v63, 8.507059e+37  ;;  %v763_v42 = vand.u32 2147483648, %v2367_v53  ;;  %vm757_vm11 = vweird.f32 %v2367_v53 }
 0x1a7   : > { %v764_v47 = vor.u32 1.1754944e-38, %v763_v42 }
 0x1a8   : > { %v1592_v48 = vpop.eup %1591 }
 0x1a9   : > { %v1594_v49 = vpop.eup %1593  ;;  %v812_v50 = vmul.f32 %v1592_v48, %v810_v40  ;;  %vm817_vm13 = vweird.f32 %v1592_v48 }
 0x1aa   : > { %v894_v51 = vadd.f32 1.0, %v1594_v49  ;;  %v1596_v52 = vpop.eup %1595  ;;  %vm818_vm15 = vmor %vm816_vm14, %vm817_vm13  ;;  %vm1033_vm14 = vcmask 64512  }
 0x1ab   : > { %v813_v54 = vsub.f32 1.0, %v812_v50  ;;  %v896_v56 = vmul.f32 %v1596_v52, %v893_v45  ;;  %vm901_vm1 = vweird.f32 %v1596_v52 }
 0x1ac   : > { %1597 = vrcp.f32 %v894_v51  ;;  %vm902_vm4 = vmor %vm900_vm3, %vm901_vm1  ;;  %v921_v12 = vand.u32 2147483648, %v894_v51  ;;  %v919_v15 = vand.u32 2147483647, %v894_v51  ;;  %vm915_vm7 = vweird.f32 %v894_v51 }
 0x1ad   : > { %v814_v57 = vmul.f32 %v1592_v48, %v813_v54  ;;  %v897_v59 = vsub.f32 1.0, %v896_v56  ;;  %1599 = vrcp.f32 %v2367_v53  ;;  %v1575_v56 = vld [vmem:[#allocation17 + $0x4] ss:$0 sm:$0xff] }
 0x1ae   : > { %v922_v24 = vor.u32 1.1754944e-38, %v921_v12  ;;  %vm920_vm9 = vcmp.eq.f32.partialorder %v919_v15, 8.507059e+37 }
 0x1af   : > { %v815_v60 = vadd.f32 %v1592_v48, %v814_v57  ;;  %v898_v62 = vmul.f32 %v1596_v52, %v897_v59 }
 0x1b1   : > { %v819_v0 = vsel %vm818_vm15, %v1592_v48, %v815_v60  ;;  %v899_v3 = vadd.f32 %v1596_v52, %v898_v62  ;;  %vm959_vm15 = vcmask 130048  }
 0x1b2   : > { %v1598_v1 = vpop.eup %1597  ;;  %v824_v2 = vsel %vm821_vm2, %v823_v13, %v819_v0 }
 0x1b3   : > { %v826_v4 = vmul.f32 %v824_v2, %v2351_v25  ;;  %v911_v6 = vmul.f32 %v1598_v1, %v894_v51  ;;  %v903_v7 = vsel %vm902_vm4, %v1596_v52, %v899_v3  ;;  %v1600_v8 = vpop.eup %1599  ;;  %vm916_vm6 = vweird.f32 %v1598_v1 }
 0x1b4   : > { %v908_v10 = vsel %vm905_vm5, %v907_v5, %v903_v7  ;;  %v753_v18 = vmul.f32 %v1600_v8, %v2367_v53  ;;  %vm917_vm8 = vmor %vm915_vm7, %vm916_vm6  ;;  %vm758_vm10 = vweird.f32 %v1600_v8 }
 0x1b5   : > { %1001 = vxpose.xlu1.b32.start.end [1/1] (short) (narrow) %v826_v4, 32  ;;  %v1102_v9 = vsel %vm573_vm0, %v826_v4, 0.0  ;;  %v912_v11 = vsub.f32 1.0, %v911_v6  ;;  %v925_v19 = vmul.f32 %v908_v10, %v2355_v31  ;;  %vm759_vm12 = vmor %vm757_vm11, %vm758_vm10 }
 0x1b6   : > { %v1103_v16 = vrot.slane %v1102_v9, 4  ;;  %v754_v30 = vsub.f32 1.0, %v753_v18  ;;  %v1163_v18 = vld [vmem:[#allocation15 + $0x18] sm:$0xff] }
 0x1b7   : > { %v913_v14 = vmul.f32 %v1598_v1, %v912_v11  ;;  %927 = vxpose.xlu0.b32.start [1/2] (short) (narrow) %v925_v19, 32  ;;  %v1109_v31 = vsel %vm573_vm0, %v925_v19, 0.0  ;;  %1180 = vmatpush.msrb.mxu1 %v1163_v18 }
 0x1b8   : > { %v1104_v26 = vadd.f32 %v1103_v16, %v1102_v9  ;;  %v755_v36 = vmul.f32 %v1600_v8, %v754_v30 }
 0x1b9   : > { %v914_v23 = vadd.f32 %v1598_v1, %v913_v14 }
 0x1ba   : > { %v1105_v35 = vrot.slane %v1104_v26, 2  ;;  %v756_v41 = vadd.f32 %v1600_v8, %v755_v36 }
 0x1bb   : > { %v918_v25 = vsel %vm917_vm8, %v1598_v1, %v914_v23  ;;  %v1162_v23 = vld [vmem:[#allocation15 + $0x10] sm:$0xff] }
 0x1bc   : > { %v923_v29 = vsel %vm920_vm9, %v922_v24, %v918_v25  ;;  %v1106_v37 = vadd.f32 %v1105_v35, %v1104_v26  ;;  %v760_v46 = vsel %vm759_vm12, %v1600_v8, %v756_v41  ;;  %v1161_v25 = vld [vmem:[#allocation15 + $0x8] sm:$0xff]  ;;  %1181 = vmatpush.msrb.mxu1 %v1162_v23  ;;  %v1160_v26 = vld [vmem:[#allocation15] sm:$0xff] }
 0x1bd   : > { %v926_v32 = vmul.f32 %v923_v29, %v2362_v38  ;;  %v761_v38 = vand.u32 2147483647, %v2367_v53 }
 0x1be   : > { %v1107_v44 = vrot.slane %v1106_v37, 1  ;;  %1182 = vmatpush.msrb.mxu1 %v1161_v25 }
 0x1bf   : > { %v1110_v28 = vsel %vm573_vm0, %v926_v32, 0.0  ;;  %928 = vxpose.xlu0.b32.end [2/2] (short) (narrow) %v926_v32, 32  ;;  %vm762_vm13 = vcmp.eq.f32.partialorder %v761_v38, 8.507059e+37 }
 0x1c0   : > { %v1111_v27 = vadd.f32 %v1110_v28, %v1109_v31  ;;  %v765_v48 = vsel %vm762_vm13, %v764_v47, %v760_v46  ;;  %v1108_v49 = vadd.f32 %v1107_v44, %v1106_v37  ;;  %1183 = vmatpush.msrb.mxu1 %v1160_v26 }
 0x1c1   : > { %v767_v52 = vmul.f32 %v765_v48, %v2357_v34 }
 0x1c2   : > { %v1112_v33 = vrot.slane %v1111_v27, 4 }
 0x1c4   : > { %v1113_v40 = vadd.f32 %v1112_v33, %v1111_v27 }
 0x1c6   : > { %v1114_v43 = vrot.slane %v1113_v40, 2 }
 0x1c8   : > { %v1115_v45 = vadd.f32 %v1114_v43, %v1113_v40  ;;  %v1576_v40 = vld [vmem:[#allocation17 + $0x5] ss:$0 sm:$0xff] }
 0x1ca   : > { %v1116_v39 = vrot.slane %v1115_v45, 1 }
 0x1cc   : > { %v1117_v50 = vadd.f32 %v1116_v39, %v1115_v45 }
 0x1ce   : > { %v1118_v51 = vadd.f32 %v1117_v50, %v1108_v49 }
 0x1d0   : > { %v1119_v54 = vmul.f32 %v1118_v51, %v767_v52 }
 0x207   : > { %v703_v55 = vpop.f32.mrf.mxu0 }
 0x208   : > { %v704_v58 = vadd.f32 %v1575_v56, %v703_v55 }
 0x20f   : > { %v706_v57 = vpop.f32.mrf.mxu0 }
 0x210   : > { %v707_v59 = vadd.f32 %v1575_v56, %v706_v57 }
 0x212   : > { %986 = vmatpush.msra.mxu2 %v707_v59 }
 0x214   : > { %987 = vmatpush.msra.mxu2 %v704_v58 }
 0x259   : > { %v1017_v53 = vpop.trf.xlu1 }
 0x25a   : > { %1421 = vmatmul.msk.f32.vlgmr.msrb.gmra.mxu3 %vm1033_vm14, %v1017_v53 }
 0x25b   : > { %v943_v60 = vpop.trf.xlu0 }
 0x25c   : > { %1417 = vmatmul.msk.f32.vlgmr.msra.gmra.mxu2 %vm959_vm15, %v943_v60 }
 0x261   : > { %v1018_v61 = vpop.trf.xlu1 }
 0x262   : > { %1422 = vmatmul.msk.f32.gmra.mxu3 %vm1033_vm14, %v1018_v61 }
 0x263   : > { %v944_v13 = vpop.trf.xlu0 }
 0x264   : > { %1418 = vmatmul.msk.f32.gmra.mxu2 %vm959_vm15, %v944_v13 }
 0x269   : > { %v1019_v62 = vpop.trf.xlu1 }
 0x26a   : > { %1423 = vmatmul.msk.f32.gmra.mxu3 %vm1033_vm14, %v1019_v62 }
 0x26b   : > { %v945_v34 = vpop.trf.xlu0 }
 0x26c   : > { %1419 = vmatmul.msk.f32.gmra.mxu2 %vm959_vm15, %v945_v34 }
 0x271   : > { %v1020_v63 = vpop.trf.xlu1 }
 0x272   : > { %1424 = vmatmul.msk.f32.gmra.mxu3 %vm1033_vm14, %v1020_v63 }
 0x273   : > { %v946_v0 = vpop.trf.xlu0 }
 0x274   : > { %1420 = vmatmul.msk.f32.gmra.mxu2 %vm959_vm15, %v946_v0 }
 0x2dd   : > { %v1063_v1 = vpop.f32.mrf.mxu3 }
 0x2df   : > { %v989_v2 = vpop.f32.mrf.mxu2 }
 0x2e0   : > { %v1064_v12 = vadd.f32 %v1063_v1, %v989_v2 }
 0x2e2   : > { %v1075_v16 = vmul.f32 %v1064_v12, %v2315_v22 }
 0x2e5   : > { %v1066_v3 = vpop.f32.mrf.mxu3 }
 0x2e7   : > { %v992_v4 = vpop.f32.mrf.mxu2 }
 0x2e8   : > { %v1067_v11 = vadd.f32 %v1066_v3, %v992_v4 }
 0x2ea   : > { %v1076_v15 = vmul.f32 %v1067_v11, %v2311_v21 }
 0x2ed   : > { %v1069_v5 = vpop.f32.mrf.mxu3 }
 0x2ef   : > { %v995_v6 = vpop.f32.mrf.mxu2 }
 0x2f0   : > { %v1070_v9 = vadd.f32 %v1069_v5, %v995_v6 }
 0x2f2   : > { %v1077_v14 = vmul.f32 %v1070_v9, %v2307_v20 }
 0x2f5   : > { %v1072_v7 = vpop.f32.mrf.mxu3 }
 0x2f7   : > { %v998_v8 = vpop.f32.mrf.mxu2 }
 0x2f8   : > { %v1073_v10 = vadd.f32 %v1072_v7, %v998_v8 }
 0x2fa   : > { %v1078_v19 = vmul.f32 %v1073_v10, %v2293_v17 }
 0x2fc   : > { %1094 = vmatpush.msra.mxu0 %v1078_v19 }
 0x2fe   : > { %1095 = vmatpush.msra.mxu0 %v1077_v14 }
 0x300   : > { %1096 = vmatpush.msra.mxu0 %v1076_v15 }
 0x302   : > { %1097 = vmatpush.msra.mxu0 %v1075_v16 }
 0x303   : > { %1425 = vmatmul.msk.f32.vlgmr.msra.gmra.mxu0 %vm573_vm0, %v767_v52 }
 0x304   : > { %1135 = vmatpush.msrb.mxu0 %v2293_v17 }
 0x306   : > { %1136 = vmatpush.msrb.mxu0 %v2307_v20 }
 0x308   : > { %1137 = vmatpush.msrb.mxu0 %v2311_v21 }
 0x30a   : > { %1138 = vmatpush.msrb.mxu0 %v2315_v22 }
 0x30b   : > { %1426 = vmatmul.msk.f32.vlgmr.msrb.gmra.mxu0 %vm573_vm0, %v1119_v54 }
 0x380   : > { %v1099_v24 = vpop.f32.mrf.mxu0 }
 0x388   : > { %v1140_v29 = vpop.f32.mrf.mxu0 }
 0x389   : > { %v1141_v30 = vadd.f32 1e-06, %v1140_v29 }
 0x38b   : > { %1601 = vrcp.f32 %v1141_v30  ;;  %v1154_v21 = vand.u32 2147483648, %v1141_v30  ;;  %v1152_v31 = vand.u32 2147483647, %v1141_v30  ;;  %vm1148_vm2 = vweird.f32 %v1141_v30 }
 0x38d   : > { %v1155_v35 = vor.u32 1.1754944e-38, %v1154_v21  ;;  %vm1153_vm4 = vcmp.eq.f32.partialorder %v1152_v31, 8.507059e+37 }
 0x391   : > { %v1602_v17 = vpop.eup %1601 }
 0x392   : > { %v1144_v20 = vmul.f32 %v1602_v17, %v1141_v30  ;;  %vm1149_vm1 = vweird.f32 %v1602_v17 }
 0x393   : > { %vm1150_vm3 = vmor %vm1148_vm2, %vm1149_vm1 }
 0x394   : > { %v1145_v32 = vsub.f32 1.0, %v1144_v20 }
 0x396   : > { %v1146_v22 = vmul.f32 %v1602_v17, %v1145_v32 }
 0x398   : > { %v1147_v28 = vadd.f32 %v1602_v17, %v1146_v22 }
 0x39a   : > { %v1151_v27 = vsel %vm1150_vm3, %v1602_v17, %v1147_v28 }
 0x39b   : > { %v1156_v36 = vsel %vm1153_vm4, %v1155_v35, %v1151_v27 }
 0x39c   : > { %v1157_v33 = vmul.f32 %v1156_v36, %v1099_v24 }
 0x39e   : > { %1158 = vst.msk [vmem:[#allocation2] sm:$0xff] %vm573_vm0, %v1157_v33 }
 0x3a5   : > { %v1159_v37 = vld [vmem:[#allocation2] sm:$0xff] }
 0x3a6   : > { %1427 = vmatmul.msk.f32.vlgmr.msrb.gmra.mxu1 %vm573_vm0, %v1159_v37 }
 0x423   : > { %v1185_v41 = vpop.f32.mrf.mxu1 }
 0x424   : > { %v1186_v42 = vadd.f32 %v1576_v40, %v1185_v41 }
 0x426   : > { %1188 = vst.msk [vmem:[%s550_s24] sm:$0xff] %vm573_vm0, %v1186_v42 }
 0x427   : > { %1930 = shalt.err (!%p1927_p8)
}
 0x428   : > { %1469 = dma.vmem_to_hbm [thread:$0]  (%p2193_p4), %s1203_s6, 128, %s1205_s4, %s1190_s17  }
 0x429 PF: > { %s1216_s19 = sand.u32 1, %s1981_s13   ;;  %p2472_p10 = scmp.ge.s32.totalorder %s1993_s16, 2 }
 0x42a   : > { %s1217_s27 = scalar_lea.sflag [#allocation5], %s1216_s19 }
 0x42b   : > { %p1504_p13 = pnand %p2472_p10, %p2197_p6 }
 0x42d   : > { %p1505_p11 = pneg %p1504_p13 }
 0x42f   : > { %1976 = dma.done.wait (%p1505_p11), %s1217_s27, 128  }
 0x430   : > { %1978 = vsyncadd (%p1505_p11), %s1217_s27, 4294967168  ;;  %s2473_s3 = sld [smem:[#allocation29_spill]]  ;;  %p30_p0 = scmp.ge.s32.totalorder %s2165_s29, 4  }
 0x431   : > { %s2474_s13 = smov %s1985_s14  ;;  %s2475_s14 = smov %s1989_s15 }
 0x432   : > { %s2477_s16 = smov %s2165_s29  ;;  %32 = sbr.rel (!%p30_p0) target bundleno = 20 (0x14), region = 150 }
 0x436   : > { %s2476_s15 = smov %s2473_s3 }
 0x437   :  { %1223 = vsyncpa [#allocation4], 1 }
 0x438   :  { %1225 = vsyncpa [#allocation4 + $0x1], 1 }
 0x439   :  { %1226 = vsyncpa [#allocation7], 1 }
 0x43a   :  { %1228 = vsyncpa [#allocation7 + $0x1], 1 }
 0x43b   :  { %1229 = vsyncpa [#allocation10], 1 }
 0x43c   :  { %1230 = vsyncpa [#allocation13], 1 }
 0x43d   :  { %1231 = vsyncpa [#allocation16], 1 }
 0x43e   :  { %1232 = vsyncpa [#allocation19], 1 }
 0x43f   :  { %1233 = vsyncpa [#allocation5], 1 }
 0x440   :  { %1235 = vsyncpa [#allocation5 + $0x1], 1 }

</bundles_post_ra>
